<compile_context>
chip_gen: v7x
topology: tpu7x:2x2x1
jax: 0.10.0
libtpu: 0.0.40
codegen_flags: <defaults>
</compile_context>

<pallas_src>
import math
from functools import partial

import jax
import jax.numpy as jnp
import numpy as np
from jax import lax
from jax.experimental import pallas as pl
from jax.experimental.pallas import tpu as pltpu


# ------------------------------- kernel ------------------------------------ #

def _cbam_kernel(x_ref, w1t_ref, w2_ref, wsp_ref, out_ref,
                 padmax_ref, padmean_ref, *, hh, ww, n, c, bb, padl):
    """Fused CBAM forward for a block of `bb` batch elements.

    x_ref        : (bb, C, N)  channels-on-sublanes, tokens-on-lanes (N = hh*ww)
    w1t_ref      : (C, C//r)   channel-MLP conv1 weight, transposed
    w2_ref       : (C, C//r)   channel-MLP conv2 weight (original orientation)
    wsp_ref      : (18,) SMEM  3x3 spatial-conv taps [max-map taps | mean-map taps]
    out_ref      : (bb, C, N)  gated output
    pad*_ref     : (1, N + 2*padl) VMEM scratch: zero-padded channel max/mean maps
    """
    f32 = jnp.float32
    inv_n = 1.0 / n
    inv_c = 1.0 / c

    # --- everything independent of the channel gate, hoisted up front -------
    tok = lax.broadcasted_iota(jnp.int32, (1, n), 1)          # lane iota
    if ww & (ww - 1) == 0:                                    # power-of-two W
        col = jnp.bitwise_and(tok, ww - 1)
    else:
        col = tok % ww
    col_ok = {-1: col >= 1, 1: col < (ww - 1)}                # horizontal borders

    zpad = jnp.zeros((1, padl), f32)
    padmax_ref[:, 0:padl] = zpad
    padmax_ref[:, padl + n:padl + n + padl] = zpad
    padmean_ref[:, 0:padl] = zpad
    padmean_ref[:, padl + n:padl + n + padl] = zpad

    w1t = w1t_ref[...]                                        # (C, Cr)
    w2 = w2_ref[...]                                          # (C, Cr)
    w_max = [wsp_ref[k] for k in range(9)]                    # SMEM scalar taps
    w_mean = [wsp_ref[9 + k] for k in range(9)]

    for b in range(bb):
        xb = x_ref[b]                                         # (C, N)

        # ---------------- channel attention (all VPU/XLU) -------------------
        mx = jnp.max(xb, axis=1, keepdims=True)               # (C, 1)
        av = jnp.sum(xb, axis=1, keepdims=True) * inv_n       # (C, 1)
        # mlp(max)+mlp(avg) = W2 @ (relu(W1@max) + relu(W1@avg))
        h = (jnp.maximum(jnp.sum(w1t * mx, axis=0, keepdims=True), 0.0)
             + jnp.maximum(jnp.sum(w1t * av, axis=0, keepdims=True), 0.0))  # (1, Cr)
        pre = jnp.sum(w2 * h, axis=1, keepdims=True)          # (C, 1)
        ch_gate = 1.0 / (1.0 + jnp.exp(-pre))                 # (C, 1) sigmoid
        yb = xb * ch_gate                                     # (C, N) lane-broadcast

        # ---------------- spatial attention ---------------------------------
        smax = jnp.max(yb, axis=0, keepdims=True)             # (1, N)
        smean = jnp.sum(yb, axis=0, keepdims=True) * inv_c    # (1, N)
        padmax_ref[:, padl:padl + n] = smax                   # aligned stores
        padmean_ref[:, padl:padl + n] = smean

        # 3x3 SAME conv over the (hh, ww) grid == 9 shifted reads of the
        # zero-padded lane-dense maps (shift = di*ww + dj along lanes).
        sconv = jnp.zeros((1, n), f32)
        for di in (-1, 0, 1):
            for dj in (-1, 0, 1):
                k = (di + 1) * 3 + (dj + 1)
                start = padl + di * ww + dj
                sm = padmax_ref[:, start:start + n]           # (1, N)
                sa = padmean_ref[:, start:start + n]          # (1, N)
                term = sm * w_max[k] + sa * w_mean[k]
                if dj != 0:                                   # horizontal border mask
                    term = jnp.where(col_ok[dj], term, 0.0)
                sconv = sconv + term

        sp_gate = 1.0 / (1.0 + jnp.exp(-sconv))               # (1, N) sigmoid
        out_ref[b] = yb * sp_gate                             # sublane-broadcast


# ------------------------------- wrapper ------------------------------------ #

def cbam_forward(x_nchw, params):
    """CBAM forward.  x_nchw: (B, C, H, W) float32.  Returns (B, C, H, W)."""
    B, C, Hh, Ww = x_nchw.shape
    N = Hh * Ww
    f32 = jnp.float32
    PADL = 128 * math.ceil((Ww + 1) / 128)        # lane-aligned zero pad >= max|shift|

    x_tok = x_nchw.reshape(B, C, N).astype(f32)   # pure reshape, no transpose

    w1t = params["w_mlp1"].astype(f32).T          # (C, C//r) tiny host-side transpose
    w2 = params["w_mlp2"].astype(f32)             # (C, C//r) original orientation
    wsp = params["w_sp"].astype(f32).reshape(-1)  # (18,) [max taps | mean taps]

    # Batch split: 2 blocks when B is even (megacore on v7x); otherwise one
    # whole-batch grid step (no per-step overhead on single-TC v5e/v6e).
    G = 2 if (B >= 2 and B % 2 == 0) else 1
    Bb = B // G

    kernel = partial(_cbam_kernel, hh=Hh, ww=Ww, n=N, c=C, bb=Bb, padl=PADL)

    out_tok = pl.pallas_call(
        kernel,
        out_shape=jax.ShapeDtypeStruct((B, C, N), f32),
        grid=(G,),
        in_specs=[
            pl.BlockSpec((Bb, C, N), lambda g: (g, 0, 0)),          # x
            pl.BlockSpec(w1t.shape, lambda g: (0, 0)),              # MLP weight 1 (T)
            pl.BlockSpec(w2.shape, lambda g: (0, 0)),               # MLP weight 2
            pl.BlockSpec(memory_space=pltpu.MemorySpace.SMEM),      # 3x3 conv taps
        ],
        out_specs=pl.BlockSpec((Bb, C, N), lambda g: (g, 0, 0)),
        scratch_shapes=[pltpu.VMEM((1, N + 2 * PADL), f32),
                        pltpu.VMEM((1, N + 2 * PADL), f32)],
        compiler_params=pltpu.CompilerParams(
            dimension_semantics=("parallel",)),
    )(x_tok, w1t, w2, wsp)

    return out_tok.reshape(B, C, Hh, Ww)


# --------------------------- pure-JAX reference ----------------------------- #

def reference(x, p):
    hp = lax.Precision.HIGHEST
    mx = jnp.max(x, axis=(2, 3))                              # (B, C)
    av = jnp.mean(x, axis=(2, 3))
    mlp = lambda v: jnp.dot(
        jnp.maximum(jnp.dot(v, p["w_mlp1"].T, precision=hp), 0.0),
        p["w_mlp2"].T, precision=hp)
    ch = jax.nn.sigmoid(mlp(mx) + mlp(av))[:, :, None, None]
    y = x * ch
    mo = jnp.max(y, axis=1, keepdims=True)
    ao = jnp.mean(y, axis=1, keepdims=True)
    sin = jnp.concatenate([mo, ao], axis=1)
    sp = jax.nn.sigmoid(lax.conv_general_dilated(
        sin, p["w_sp"], (1, 1), "SAME",
        dimension_numbers=("NCHW", "OIHW", "NCHW"), precision=hp))
    return y * sp


# ---------------------------------- main ------------------------------------ #

if __name__ == "__main__":
    B, C, Hh, Ww = 2, 32, 16, 16        # NCHW, reduction=4, spatial_kernel=3
    reduction = 4
    Cr = C // reduction

    key = jax.random.PRNGKey(0)
    k0, k1, k2, k3 = jax.random.split(key, 4)
    rn = lambda k, shape, s=0.2: s * jax.random.normal(k, shape, jnp.float32)

    params = dict(
        w_mlp1=rn(k0, (Cr, C)),         # Conv2d(C, C//r, 1, bias=False).weight
        w_mlp2=rn(k1, (C, Cr)),         # Conv2d(C//r, C, 1, bias=False).weight
        w_sp=rn(k2, (1, 2, 3, 3)),      # Conv2d(2, 1, 3, padding=1, bias=False).weight
    )
    x = jax.random.normal(k3, (B, C, Hh, Ww), jnp.float32)

    out = jax.block_until_ready(cbam_forward(x, params))
    ref = jax.block_until_ready(reference(x, params))
    np.testing.assert_allclose(np.asarray(out), np.asarray(ref),
                               rtol=2e-3, atol=1e-4)
    print("KERNEL_OK")
</pallas_src>

<mosaic_0001>
module attributes {stable_mosaic.version = 11 : i64} {
  func.func @_cbam_kernel(%arg0: i32, %arg1: memref<1x32x256xf32, #tpu.memory_space<vmem>>, %arg2: memref<32x8xf32, #tpu.memory_space<vmem>>, %arg3: memref<32x8xf32, #tpu.memory_space<vmem>>, %arg4: memref<18xf32, #tpu.memory_space<smem>>, %arg5: memref<1x32x256xf32, #tpu.memory_space<vmem>>, %arg6: memref<1x512xf32, #tpu.memory_space<vmem>>, %arg7: memref<1x512xf32, #tpu.memory_space<vmem>>) attributes {dimension_semantics = [#tpu.dimension_semantics<parallel>], iteration_bounds = array<i64: 2>, scalar_prefetch = 0 : i64, scratch_operands = 2 : i64, tpu.core_type = #tpu.core_type<tc>, window_params = [{transform_indices = @transform_0, window_bounds = array<i64: 1, 32, 256>}, {pipeline_mode = #tpu.pipeline_mode<synchronous>, transform_indices = @transform_1, window_bounds = array<i64: 32, 8>}, {pipeline_mode = #tpu.pipeline_mode<synchronous>, transform_indices = @transform_2, window_bounds = array<i64: 32, 8>}, {transform_indices = @transform_3, window_bounds = array<i64: 18>}, {transform_indices = @transform_4, window_bounds = array<i64: 1, 32, 256>}]} {
    %0 = tpu.iota {dimensions = array<i32: 1>} : vector<1x256xi32>
    %c15_i32 = arith.constant 15 : i32
    %1 = vector.broadcast %c15_i32 : i32 to vector<1x256xi32>
    %2 = arith.andi %0, %1 : vector<1x256xi32>
    %c1_i32 = arith.constant 1 : i32
    %3 = vector.broadcast %c1_i32 : i32 to vector<1x256xi32>
    %4 = arith.cmpi sge, %2, %3 : vector<1x256xi32>
    %c15_i32_0 = arith.constant 15 : i32
    %5 = vector.broadcast %c15_i32_0 : i32 to vector<1x256xi32>
    %6 = arith.cmpi slt, %2, %5 : vector<1x256xi32>
    %cst = arith.constant 0.000000e+00 : f32
    %7 = vector.broadcast %cst : f32 to vector<1x128xf32>
    %c0 = arith.constant 0 : index
    %c0_1 = arith.constant 0 : index
    %8 = vector.load %arg6[%c0, %c0_1] : memref<1x512xf32, #tpu.memory_space<vmem>>, vector<1x128xf32>
    tpu.vector_store %arg6[%c0, %c0_1], %7 {strides = array<i32>} : memref<1x512xf32, #tpu.memory_space<vmem>>, vector<1x128xf32>,
    %c0_2 = arith.constant 0 : index
    %c384 = arith.constant 384 : index
    %9 = vector.load %arg6[%c0_2, %c384] : memref<1x512xf32, #tpu.memory_space<vmem>>, vector<1x128xf32>
    tpu.vector_store %arg6[%c0_2, %c384], %7 {strides = array<i32>} : memref<1x512xf32, #tpu.memory_space<vmem>>, vector<1x128xf32>,
    %c0_3 = arith.constant 0 : index
    %c0_4 = arith.constant 0 : index
    %10 = vector.load %arg7[%c0_3, %c0_4] : memref<1x512xf32, #tpu.memory_space<vmem>>, vector<1x128xf32>
    tpu.vector_store %arg7[%c0_3, %c0_4], %7 {strides = array<i32>} : memref<1x512xf32, #tpu.memory_space<vmem>>, vector<1x128xf32>,
    %c0_5 = arith.constant 0 : index
    %c384_6 = arith.constant 384 : index
    %11 = vector.load %arg7[%c0_5, %c384_6] : memref<1x512xf32, #tpu.memory_space<vmem>>, vector<1x128xf32>
    tpu.vector_store %arg7[%c0_5, %c384_6], %7 {strides = array<i32>} : memref<1x512xf32, #tpu.memory_space<vmem>>, vector<1x128xf32>,
    %c0_7 = arith.constant 0 : index
    %c0_8 = arith.constant 0 : index
    %12 = vector.load %arg2[%c0_7, %c0_8] : memref<32x8xf32, #tpu.memory_space<vmem>>, vector<32x8xf32>
    %c0_9 = arith.constant 0 : index
    %c0_10 = arith.constant 0 : index
    %13 = vector.load %arg3[%c0_9, %c0_10] : memref<32x8xf32, #tpu.memory_space<vmem>>, vector<32x8xf32>
    %c0_11 = arith.constant 0 : index
    %14 = memref.load %arg4[%c0_11] : memref<18xf32, #tpu.memory_space<smem>>
    %c1 = arith.constant 1 : index
    %15 = memref.load %arg4[%c1] : memref<18xf32, #tpu.memory_space<smem>>
    %c2 = arith.constant 2 : index
    %16 = memref.load %arg4[%c2] : memref<18xf32, #tpu.memory_space<smem>>
    %c3 = arith.constant 3 : index
    %17 = memref.load %arg4[%c3] : memref<18xf32, #tpu.memory_space<smem>>
    %c4 = arith.constant 4 : index
    %18 = memref.load %arg4[%c4] : memref<18xf32, #tpu.memory_space<smem>>
    %c5 = arith.constant 5 : index
    %19 = memref.load %arg4[%c5] : memref<18xf32, #tpu.memory_space<smem>>
    %c6 = arith.constant 6 : index
    %20 = memref.load %arg4[%c6] : memref<18xf32, #tpu.memory_space<smem>>
    %c7 = arith.constant 7 : index
    %21 = memref.load %arg4[%c7] : memref<18xf32, #tpu.memory_space<smem>>
    %c8 = arith.constant 8 : index
    %22 = memref.load %arg4[%c8] : memref<18xf32, #tpu.memory_space<smem>>
    %c9 = arith.constant 9 : index
    %23 = memref.load %arg4[%c9] : memref<18xf32, #tpu.memory_space<smem>>
    %c10 = arith.constant 10 : index
    %24 = memref.load %arg4[%c10] : memref<18xf32, #tpu.memory_space<smem>>
    %c11 = arith.constant 11 : index
    %25 = memref.load %arg4[%c11] : memref<18xf32, #tpu.memory_space<smem>>
    %c12 = arith.constant 12 : index
    %26 = memref.load %arg4[%c12] : memref<18xf32, #tpu.memory_space<smem>>
    %c13 = arith.constant 13 : index
    %27 = memref.load %arg4[%c13] : memref<18xf32, #tpu.memory_space<smem>>
    %c14 = arith.constant 14 : index
    %28 = memref.load %arg4[%c14] : memref<18xf32, #tpu.memory_space<smem>>
    %c15 = arith.constant 15 : index
    %29 = memref.load %arg4[%c15] : memref<18xf32, #tpu.memory_space<smem>>
    %c16 = arith.constant 16 : index
    %30 = memref.load %arg4[%c16] : memref<18xf32, #tpu.memory_space<smem>>
    %c17 = arith.constant 17 : index
    %31 = memref.load %arg4[%c17] : memref<18xf32, #tpu.memory_space<smem>>
    %c0_12 = arith.constant 0 : index
    %c0_13 = arith.constant 0 : index
    %c0_14 = arith.constant 0 : index
    %32 = vector.load %arg1[%c0_12, %c0_13, %c0_14] : memref<1x32x256xf32, #tpu.memory_space<vmem>>, vector<1x32x256xf32>
    %33 = vector.shape_cast %32 : vector<1x32x256xf32> to vector<32x256xf32>
    %cst_15 = arith.constant dense<0xFF800000> : vector<32xf32>
    %34 = vector.multi_reduction <maximumf>, %33, %cst_15 [1] : vector<32x256xf32> to vector<32xf32>
    %35 = vector.shape_cast %34 : vector<32xf32> to vector<32x1xf32>
    %cst_16 = arith.constant dense<0.000000e+00> : vector<32xf32>
    %36 = vector.multi_reduction <add>, %33, %cst_16 [1] : vector<32x256xf32> to vector<32xf32>
    %37 = vector.shape_cast %36 : vector<32xf32> to vector<32x1xf32>
    %cst_17 = arith.constant 3.906250e-03 : f32
    %38 = vector.broadcast %cst_17 : f32 to vector<32x1xf32>
    %39 = arith.mulf %37, %38 : vector<32x1xf32>
    %40 = vector.broadcast %35 : vector<32x1xf32> to vector<32x8xf32>
    %41 = arith.mulf %12, %40 : vector<32x8xf32>
    %cst_18 = arith.constant dense<0.000000e+00> : vector<8xf32>
    %42 = vector.multi_reduction <add>, %41, %cst_18 [0] : vector<32x8xf32> to vector<8xf32>
    %43 = vector.shape_cast %42 : vector<8xf32> to vector<1x8xf32>
    %cst_19 = arith.constant 0.000000e+00 : f32
    %44 = vector.broadcast %cst_19 : f32 to vector<1x8xf32>
    %45 = arith.maximumf %43, %44 : vector<1x8xf32>
    %46 = vector.broadcast %39 : vector<32x1xf32> to vector<32x8xf32>
    %47 = arith.mulf %12, %46 : vector<32x8xf32>
    %cst_20 = arith.constant dense<0.000000e+00> : vector<8xf32>
    %48 = vector.multi_reduction <add>, %47, %cst_20 [0] : vector<32x8xf32> to vector<8xf32>
    %49 = vector.shape_cast %48 : vector<8xf32> to vector<1x8xf32>
    %cst_21 = arith.constant 0.000000e+00 : f32
    %50 = vector.broadcast %cst_21 : f32 to vector<1x8xf32>
    %51 = arith.maximumf %49, %50 : vector<1x8xf32>
    %52 = arith.addf %45, %51 : vector<1x8xf32>
    %53 = vector.broadcast %52 : vector<1x8xf32> to vector<32x8xf32>
    %54 = arith.mulf %13, %53 : vector<32x8xf32>
    %cst_22 = arith.constant dense<0.000000e+00> : vector<32xf32>
    %55 = vector.multi_reduction <add>, %54, %cst_22 [1] : vector<32x8xf32> to vector<32xf32>
    %56 = vector.shape_cast %55 : vector<32xf32> to vector<32x1xf32>
    %cst_23 = arith.constant 0.000000e+00 : f32
    %57 = vector.broadcast %cst_23 : f32 to vector<32x1xf32>
    %58 = arith.subf %57, %56 : vector<32x1xf32>
    %59 = math.exp %58 : vector<32x1xf32>
    %cst_24 = arith.constant 1.000000e+00 : f32
    %60 = vector.broadcast %cst_24 : f32 to vector<32x1xf32>
    %61 = arith.addf %60, %59 : vector<32x1xf32>
    %cst_25 = arith.constant 1.000000e+00 : f32
    %62 = vector.broadcast %cst_25 : f32 to vector<32x1xf32>
    %63 = arith.divf %62, %61 : vector<32x1xf32>
    %64 = vector.broadcast %63 : vector<32x1xf32> to vector<32x256xf32>
    %65 = arith.mulf %33, %64 : vector<32x256xf32>
    %cst_26 = arith.constant dense<0xFF800000> : vector<256xf32>
    %66 = vector.multi_reduction <maximumf>, %65, %cst_26 [0] : vector<32x256xf32> to vector<256xf32>
    %67 = vector.shape_cast %66 : vector<256xf32> to vector<1x256xf32>
    %cst_27 = arith.constant dense<0.000000e+00> : vector<256xf32>
    %68 = vector.multi_reduction <add>, %65, %cst_27 [0] : vector<32x256xf32> to vector<256xf32>
    %69 = vector.shape_cast %68 : vector<256xf32> to vector<1x256xf32>
    %cst_28 = arith.constant 3.125000e-02 : f32
    %70 = vector.broadcast %cst_28 : f32 to vector<1x256xf32>
    %71 = arith.mulf %69, %70 : vector<1x256xf32>
    %c0_29 = arith.constant 0 : index
    %c128 = arith.constant 128 : index
    %72 = vector.load %arg6[%c0_29, %c128] : memref<1x512xf32, #tpu.memory_space<vmem>>, vector<1x256xf32>
    tpu.vector_store %arg6[%c0_29, %c128], %67 {strides = array<i32>} : memref<1x512xf32, #tpu.memory_space<vmem>>, vector<1x256xf32>,
    %c0_30 = arith.constant 0 : index
    %c128_31 = arith.constant 128 : index
    %73 = vector.load %arg7[%c0_30, %c128_31] : memref<1x512xf32, #tpu.memory_space<vmem>>, vector<1x256xf32>
    tpu.vector_store %arg7[%c0_30, %c128_31], %71 {strides = array<i32>} : memref<1x512xf32, #tpu.memory_space<vmem>>, vector<1x256xf32>,
    %cst_32 = arith.constant 0.000000e+00 : f32
    %74 = vector.broadcast %cst_32 : f32 to vector<1x256xf32>
    %c0_33 = arith.constant 0 : index
    %c111 = arith.constant 111 : index
    %75 = vector.load %arg6[%c0_33, %c111] : memref<1x512xf32, #tpu.memory_space<vmem>>, vector<1x256xf32>
    %c0_34 = arith.constant 0 : index
    %c111_35 = arith.constant 111 : index
    %76 = vector.load %arg7[%c0_34, %c111_35] : memref<1x512xf32, #tpu.memory_space<vmem>>, vector<1x256xf32>
    %77 = vector.broadcast %14 : f32 to vector<1x256xf32>
    %78 = arith.mulf %75, %77 : vector<1x256xf32>
    %79 = vector.broadcast %23 : f32 to vector<1x256xf32>
    %80 = arith.mulf %76, %79 : vector<1x256xf32>
    %81 = arith.addf %78, %80 : vector<1x256xf32>
    %cst_36 = arith.constant 0.000000e+00 : f32
    %82 = vector.broadcast %cst_36 : f32 to vector<1x256xf32>
    %83 = arith.select %4, %81, %82 : vector<1x256xi1>, vector<1x256xf32>
    %84 = arith.addf %74, %83 : vector<1x256xf32>
    %c0_37 = arith.constant 0 : index
    %c112 = arith.constant 112 : index
    %85 = vector.load %arg6[%c0_37, %c112] : memref<1x512xf32, #tpu.memory_space<vmem>>, vector<1x256xf32>
    %c0_38 = arith.constant 0 : index
    %c112_39 = arith.constant 112 : index
    %86 = vector.load %arg7[%c0_38, %c112_39] : memref<1x512xf32, #tpu.memory_space<vmem>>, vector<1x256xf32>
    %87 = vector.broadcast %15 : f32 to vector<1x256xf32>
    %88 = arith.mulf %85, %87 : vector<1x256xf32>
    %89 = vector.broadcast %24 : f32 to vector<1x256xf32>
    %90 = arith.mulf %86, %89 : vector<1x256xf32>
    %91 = arith.addf %88, %90 : vector<1x256xf32>
    %92 = arith.addf %84, %91 : vector<1x256xf32>
    %c0_40 = arith.constant 0 : index
    %c113 = arith.constant 113 : index
    %93 = vector.load %arg6[%c0_40, %c113] : memref<1x512xf32, #tpu.memory_space<vmem>>, vector<1x256xf32>
    %c0_41 = arith.constant 0 : index
    %c113_42 = arith.constant 113 : index
    %94 = vector.load %arg7[%c0_41, %c113_42] : memref<1x512xf32, #tpu.memory_space<vmem>>, vector<1x256xf32>
    %95 = vector.broadcast %16 : f32 to vector<1x256xf32>
    %96 = arith.mulf %93, %95 : vector<1x256xf32>
    %97 = vector.broadcast %25 : f32 to vector<1x256xf32>
    %98 = arith.mulf %94, %97 : vector<1x256xf32>
    %99 = arith.addf %96, %98 : vector<1x256xf32>
    %cst_43 = arith.constant 0.000000e+00 : f32
    %100 = vector.broadcast %cst_43 : f32 to vector<1x256xf32>
    %101 = arith.select %6, %99, %100 : vector<1x256xi1>, vector<1x256xf32>
    %102 = arith.addf %92, %101 : vector<1x256xf32>
    %c0_44 = arith.constant 0 : index
    %c127 = arith.constant 127 : index
    %103 = vector.load %arg6[%c0_44, %c127] : memref<1x512xf32, #tpu.memory_space<vmem>>, vector<1x256xf32>
    %c0_45 = arith.constant 0 : index
    %c127_46 = arith.constant 127 : index
    %104 = vector.load %arg7[%c0_45, %c127_46] : memref<1x512xf32, #tpu.memory_space<vmem>>, vector<1x256xf32>
    %105 = vector.broadcast %17 : f32 to vector<1x256xf32>
    %106 = arith.mulf %103, %105 : vector<1x256xf32>
    %107 = vector.broadcast %26 : f32 to vector<1x256xf32>
    %108 = arith.mulf %104, %107 : vector<1x256xf32>
    %109 = arith.addf %106, %108 : vector<1x256xf32>
    %cst_47 = arith.constant 0.000000e+00 : f32
    %110 = vector.broadcast %cst_47 : f32 to vector<1x256xf32>
    %111 = arith.select %4, %109, %110 : vector<1x256xi1>, vector<1x256xf32>
    %112 = arith.addf %102, %111 : vector<1x256xf32>
    %c0_48 = arith.constant 0 : index
    %c128_49 = arith.constant 128 : index
    %113 = vector.load %arg6[%c0_48, %c128_49] : memref<1x512xf32, #tpu.memory_space<vmem>>, vector<1x256xf32>
    %c0_50 = arith.constant 0 : index
    %c128_51 = arith.constant 128 : index
    %114 = vector.load %arg7[%c0_50, %c128_51] : memref<1x512xf32, #tpu.memory_space<vmem>>, vector<1x256xf32>
    %115 = vector.broadcast %18 : f32 to vector<1x256xf32>
    %116 = arith.mulf %113, %115 : vector<1x256xf32>
    %117 = vector.broadcast %27 : f32 to vector<1x256xf32>
    %118 = arith.mulf %114, %117 : vector<1x256xf32>
    %119 = arith.addf %116, %118 : vector<1x256xf32>
    %120 = arith.addf %112, %119 : vector<1x256xf32>
    %c0_52 = arith.constant 0 : index
    %c129 = arith.constant 129 : index
    %121 = vector.load %arg6[%c0_52, %c129] : memref<1x512xf32, #tpu.memory_space<vmem>>, vector<1x256xf32>
    %c0_53 = arith.constant 0 : index
    %c129_54 = arith.constant 129 : index
    %122 = vector.load %arg7[%c0_53, %c129_54] : memref<1x512xf32, #tpu.memory_space<vmem>>, vector<1x256xf32>
    %123 = vector.broadcast %19 : f32 to vector<1x256xf32>
    %124 = arith.mulf %121, %123 : vector<1x256xf32>
    %125 = vector.broadcast %28 : f32 to vector<1x256xf32>
    %126 = arith.mulf %122, %125 : vector<1x256xf32>
    %127 = arith.addf %124, %126 : vector<1x256xf32>
    %cst_55 = arith.constant 0.000000e+00 : f32
    %128 = vector.broadcast %cst_55 : f32 to vector<1x256xf32>
    %129 = arith.select %6, %127, %128 : vector<1x256xi1>, vector<1x256xf32>
    %130 = arith.addf %120, %129 : vector<1x256xf32>
    %c0_56 = arith.constant 0 : index
    %c143 = arith.constant 143 : index
    %131 = vector.load %arg6[%c0_56, %c143] : memref<1x512xf32, #tpu.memory_space<vmem>>, vector<1x256xf32>
    %c0_57 = arith.constant 0 : index
    %c143_58 = arith.constant 143 : index
    %132 = vector.load %arg7[%c0_57, %c143_58] : memref<1x512xf32, #tpu.memory_space<vmem>>, vector<1x256xf32>
    %133 = vector.broadcast %20 : f32 to vector<1x256xf32>
    %134 = arith.mulf %131, %133 : vector<1x256xf32>
    %135 = vector.broadcast %29 : f32 to vector<1x256xf32>
    %136 = arith.mulf %132, %135 : vector<1x256xf32>
    %137 = arith.addf %134, %136 : vector<1x256xf32>
    %cst_59 = arith.constant 0.000000e+00 : f32
    %138 = vector.broadcast %cst_59 : f32 to vector<1x256xf32>
    %139 = arith.select %4, %137, %138 : vector<1x256xi1>, vector<1x256xf32>
    %140 = arith.addf %130, %139 : vector<1x256xf32>
    %c0_60 = arith.constant 0 : index
    %c144 = arith.constant 144 : index
    %141 = vector.load %arg6[%c0_60, %c144] : memref<1x512xf32, #tpu.memory_space<vmem>>, vector<1x256xf32>
    %c0_61 = arith.constant 0 : index
    %c144_62 = arith.constant 144 : index
    %142 = vector.load %arg7[%c0_61, %c144_62] : memref<1x512xf32, #tpu.memory_space<vmem>>, vector<1x256xf32>
    %143 = vector.broadcast %21 : f32 to vector<1x256xf32>
    %144 = arith.mulf %141, %143 : vector<1x256xf32>
    %145 = vector.broadcast %30 : f32 to vector<1x256xf32>
    %146 = arith.mulf %142, %145 : vector<1x256xf32>
    %147 = arith.addf %144, %146 : vector<1x256xf32>
    %148 = arith.addf %140, %147 : vector<1x256xf32>
    %c0_63 = arith.constant 0 : index
    %c145 = arith.constant 145 : index
    %149 = vector.load %arg6[%c0_63, %c145] : memref<1x512xf32, #tpu.memory_space<vmem>>, vector<1x256xf32>
    %c0_64 = arith.constant 0 : index
    %c145_65 = arith.constant 145 : index
    %150 = vector.load %arg7[%c0_64, %c145_65] : memref<1x512xf32, #tpu.memory_space<vmem>>, vector<1x256xf32>
    %151 = vector.broadcast %22 : f32 to vector<1x256xf32>
    %152 = arith.mulf %149, %151 : vector<1x256xf32>
    %153 = vector.broadcast %31 : f32 to vector<1x256xf32>
    %154 = arith.mulf %150, %153 : vector<1x256xf32>
    %155 = arith.addf %152, %154 : vector<1x256xf32>
    %cst_66 = arith.constant 0.000000e+00 : f32
    %156 = vector.broadcast %cst_66 : f32 to vector<1x256xf32>
    %157 = arith.select %6, %155, %156 : vector<1x256xi1>, vector<1x256xf32>
    %158 = arith.addf %148, %157 : vector<1x256xf32>
    %cst_67 = arith.constant 0.000000e+00 : f32
    %159 = vector.broadcast %cst_67 : f32 to vector<1x256xf32>
    %160 = arith.subf %159, %158 : vector<1x256xf32>
    %161 = math.exp %160 : vector<1x256xf32>
    %cst_68 = arith.constant 1.000000e+00 : f32
    %162 = vector.broadcast %cst_68 : f32 to vector<1x256xf32>
    %163 = arith.addf %162, %161 : vector<1x256xf32>
    %cst_69 = arith.constant 1.000000e+00 : f32
    %164 = vector.broadcast %cst_69 : f32 to vector<1x256xf32>
    %165 = arith.divf %164, %163 : vector<1x256xf32>
    %166 = vector.broadcast %165 : vector<1x256xf32> to vector<32x256xf32>
    %167 = arith.mulf %65, %166 : vector<32x256xf32>
    %c0_70 = arith.constant 0 : index
    %c0_71 = arith.constant 0 : index
    %c0_72 = arith.constant 0 : index
    %168 = vector.load %arg5[%c0_70, %c0_71, %c0_72] : memref<1x32x256xf32, #tpu.memory_space<vmem>>, vector<1x32x256xf32>
    %169 = vector.shape_cast %168 : vector<1x32x256xf32> to vector<32x256xf32>
    %170 = vector.shape_cast %167 : vector<32x256xf32> to vector<1x32x256xf32>
    tpu.vector_store %arg5[%c0_70, %c0_71, %c0_72], %170 {strides = array<i32>} : memref<1x32x256xf32, #tpu.memory_space<vmem>>, vector<1x32x256xf32>,
    return
  }
  func.func @transform_0(%arg0: i32) -> (i32, i32, i32) {
    %c0_i32 = arith.constant 0 : i32
    %c0_i32_0 = arith.constant 0 : i32
    %c0_i32_1 = arith.constant 0 : i32
    return %arg0, %c0_i32, %c0_i32_0 : i32, i32, i32
  }
  func.func @transform_1(%arg0: i32) -> (i32, i32) {
    %c0_i32 = arith.constant 0 : i32
    %c0_i32_0 = arith.constant 0 : i32
    %c0_i32_1 = arith.constant 0 : i32
    return %c0_i32, %c0_i32_0 : i32, i32
  }
  func.func @transform_2(%arg0: i32) -> (i32, i32) {
    %c0_i32 = arith.constant 0 : i32
    %c0_i32_0 = arith.constant 0 : i32
    %c0_i32_1 = arith.constant 0 : i32
    return %c0_i32, %c0_i32_0 : i32, i32
  }
  func.func @transform_3(%arg0: i32) -> i32 {
    %c0_i32 = arith.constant 0 : i32
    %c0_i32_0 = arith.constant 0 : i32
    return %c0_i32 : i32
  }
  func.func @transform_4(%arg0: i32) -> (i32, i32, i32) {
    %c0_i32 = arith.constant 0 : i32
    %c0_i32_0 = arith.constant 0 : i32
    %c0_i32_1 = arith.constant 0 : i32
    return %arg0, %c0_i32, %c0_i32_0 : i32, i32, i32
  }
}

</mosaic_0001>

<bundles_post_ra>
// kernel: tpu_custom_call.1
= control target key start
LH: loop header
LB: loop body
LE: loop exit
PB: predicated region body
PF: predicated region fallthrough
CT: control target
= control target key end

     0   :  { %9 = vsyncpa [#allocation5], 0  ;;  %s1576_s0 = inlined_call_operand.hbm [shape: f32[2,32,256], index: 0, kind: input, shape index: {}]   ;;  %s1577_s1 = inlined_call_operand.vmem [shape: f32[32,8], index: 1, kind: input, shape index: {}]   ;;  %s1578_s2 = inlined_call_operand.vmem [shape: f32[32,8], index: 2, kind: input, shape index: {}]   ;;  %s1579_s3 = inlined_call_operand.vmem [shape: f32[18], index: 3, kind: input, shape index: {}]   ;;  %s1580_s4 = inlined_call_operand.hbm [shape: f32[2,32,256], index: 4, kind: output, shape index: {}]  }
   0x1   :  { %11 = vsyncpa [#allocation5 + $0x1], 0 }
   0x2   :  { %12 = vsyncpa [#allocation7], 0 }
   0x3   :  { %13 = vsyncpa [#allocation6], 0 }
   0x4   :  { %15 = vsyncpa [#allocation6 + $0x1], 0  ;;  %s1179_s15 = smov 0   ;;  %s1181_s16 = smov 0  }
   0x5   :  { %s1183_s17 = smov 0   ;;  %s1185_s18 = smov 0  }
   0x6 LB: > { %s1200_s19 = sadd.s32 4294967295, %s1136_s18   ;;  %s892_s20 = sadd.s32 4294967294, %s1136_s18   ;;  %s1136_s18 = sphi %s1185_s18, %s1608_s18   ;;  %s1132_s17 = sphi %s1183_s17, %s1607_s17   ;;  %s1128_s16 = sphi %s1181_s16, %s1606_s16   ;;  %s1124_s15 = sphi %s1179_s15, %s1605_s15  }
   0x7   : > { %s1204_s21 = sadd.s32 1, %s1136_s18   ;;  %s28_s22 = sadd.s32 1, %s1132_s17 }
   0x8   : > { %s25_s23 = ssub.s32 %s1136_s18, %s1204_s21  ;;  %p35_p0 = scmp.ne.s32.totalorder %s1132_s17, %s1128_s16 }
   0x9   : > { %p26_p1 = scmp.eq.s32.totalorder %s25_s23, 0  ;;  %p36_p2 = scmp.eq.s32.totalorder %s1136_s18, 0 }
   0xa   : > { %p41_p3 = scmp.ne.s32.totalorder %s1128_s16, %s1124_s15  ;;  %p1582_p4 = scmp.eq.s32.totalorder %s1200_s19, 0 }
   0xb   : > { %s1216_s24 = scalar_select %p26_p1, %s1132_s17, %s28_s22  }
   0xc   : > { %p1218_p5 = por %p36_p2, %p35_p0  ;;  %p1224_p6 = por %p1582_p4, %p41_p3 }
   0xd   : > { %p128_p7 = scmp.eq.s32.totalorder %s1200_s19, 1  ;;  %p134_p8 = scmp.eq.s32.totalorder %s892_s20, 1 }
   0xe   : > { %s1585_s26 = scalar_select %p1224_p6, 1, 0 }
   0xf   : > { %p893_p9 = scmp.ge.s32.totalorder %s1136_s18, 1  ;;  %p141_p10 = scmp.lt.s32.totalorder %s1136_s18, 3 }
  0x10   : > { %p1231_p11 = por %p128_p7, %p35_p0  ;;  %p1235_p12 = por %p134_p8, %p41_p3 }
  0x11   : > { %p1239_p13 = pnand %p893_p9, %p141_p10  ;;  %s160_s6 = sshll.u32 %s1579_s3, 4  ;;  %s161_s6 = int_to_ptr.vmem [resolvable:$true] %s160_s6 }
  0x12   : > { %s1586_s27 = scalar_select %p1231_p11, 1, 0 }
  0x13   : > { %s1587_s28 = scalar_select %p1235_p12, 1, 0 }
  0x14   : > { %p935_p1 = pneg %p1239_p13  ;;  %p948_p2 = scmp.lt.s32.totalorder %s1136_s18, 2 }
  0x15   : > { %s171_s8 = sand.u32 1, %s1132_s17   ;;  %s1021_s11 = scalar_lea.vmem %s161_s6, 16 }
  0x16   : > { %p1252_p7 = pnand %p935_p1, %p1582_p4  ;;  %p1259_p3 = pnand %p948_p2, %p1218_p5 }
  0x17   : > { %s896_s10 = sshll.u32 %s171_s8, 6  ;;  %p1022_p8 = scmp.ne.s32.totalorder %s161_s6, %s1021_s11 }
  0x18   : > { %p1023_p9 = pneg %p1252_p7  ;;  %p1029_p12 = scmp.lt.s32.totalorder %s161_s6, %s161_s6 }
  0x19   : > { %p1030_p11 = scmp.lt.s32.totalorder %s1021_s11, %s1021_s11 }
  0x1a   : > { %p1024_p10 = pnand %p1023_p9, %p1022_p8 }
  0x1b   : > { %p1031_p1 = por %p1030_p11, %p1029_p12 }
  0x1c   : > { %p1025_p0 = pneg %p1024_p10 }
  0x1e   : > { %p1032_p4 = pnand %p1031_p1, %p1025_p0 }
  0x20   : > { %1035 = shalt.err (!%p1032_p4)
}
  0x21   : > { %s1138_s12 = smov [#allocation8]   ;;  %s925_s13 = sshll.u32 %s1136_s18, 10 }
  0x22   : > { %938 = dma.vmem_to_smem (!%p1252_p7), %s161_s6, 16, %s1138_s12, [#allocation7]  }
  0x23   : > { %s175_s14 = scalar_lea.vmem [#allocation4], %s896_s10  ;;  %s1271_s25 = scalar_lea.hbm %s1576_s0, %s925_s13 }
  0x24   : > { %s182_s20 = sshll.u32 %s175_s14, 4  ;;  %s1275_s30 = scalar_lea.sflag [#allocation5], %s171_s8  ;;  %s1273_s20 = int_to_ptr.vmem [resolvable:$true] %s182_s20 }
  0x25   : > { %s1036_s5 = scalar_lea.hbm %s1271_s25, 1024  ;;  %p1038_p5 = pneg %p1259_p3 }
  0x26   : > { %p1037_p4 = scmp.ne.s32.totalorder %s1271_s25, %s1036_s5  ;;  %s1041_s10 = scalar_lea.hbm %s1576_s0, 2048 }
  0x27   : > { %p1042_p0 = scmp.lt.u32.totalorder %s1271_s25, %s1576_s0  ;;  %p1043_p2 = scmp.lt.u32.totalorder %s1041_s10, %s1036_s5 }
  0x28   : > { %p1039_p11 = pnand %p1038_p5, %p1037_p4  ;;  %p1045_p8 = scmp.lt.u32.totalorder %s1036_s5, %s1271_s25 }
  0x29   : > { %p1044_p7 = por %p1043_p2, %p1042_p0 }
  0x2a   : > { %p1040_p12 = pneg %p1039_p11 }
  0x2b   : > { %p1046_p9 = por %p1045_p8, %p1044_p7 }
  0x2d   : > { %p1047_p10 = pnand %p1046_p9, %p1040_p12 }
  0x2f   : > { %1050 = shalt.err (!%p1047_p10)
}
  0x30   : > { %s1051_s8 = scalar_lea.vmem %s1273_s20, 1024  ;;  %s1139_s13 = smov [#allocation4]  }
  0x31   : > { %p1052_p1 = scmp.ne.s32.totalorder %s1273_s20, %s1051_s8  ;;  %s1056_s14 = sshll.u32 %s1139_s13, 4  ;;  %s1057_s14 = int_to_ptr.vmem [resolvable:$false] %s1056_s14 }
  0x32   : > { %s1058_s22 = scalar_lea.vmem %s1057_s14, 2048  ;;  %p1059_p6 = scmp.lt.s32.totalorder %s1273_s20, %s1057_s14 }
  0x33   : > { %p1054_p4 = pnand %p1052_p1, %p1038_p5  ;;  %p1060_p0 = scmp.lt.s32.totalorder %s1058_s22, %s1051_s8 }
  0x35   : > { %p1055_p11 = pneg %p1054_p4  ;;  %p1061_p2 = por %p1060_p0, %p1059_p6 }
  0x37   : > { %p1062_p7 = pnand %p1061_p2, %p1055_p11 }
  0x39   : > { %1065 = shalt.err (!%p1062_p7)
}
  0x3a   : > { %s1140_s23 = smov 256   ;;  %s1141_s5 = smov 16  }
  0x3b   : > { %942 = dma.hbm_to_vmem [thread:$0]  (!%p1259_p3), %s1271_s25, 1024, %s1273_s20, %s1275_s30, %s1140_s23, %s1140_s23, %s1141_s5  }
  0x3c   : > { %194 = sbr.rel (%p1239_p13) target bundleno = 687 (0x2af), region = 36  ;;  %s1306_s6 = sand.u32 (!%p1239_p13), 1, %s1128_s16  }
  0x3d   : > { %s900_s7 = sshll.u32 (!%p1239_p13), %s1306_s6, 6  ;;  %s197_s10 = scalar_lea.sflag (!%p1239_p13), [#allocation5], %s1306_s6 }
  0x3e   : > { %s200_s11 = scalar_lea.vmem (!%p1239_p13), [#allocation4], %s900_s7  ;;  %p1591_p6 = scmp.ne.s32.totalorder (!%p1239_p13), %s1585_s26, 0 }
  0x43   : > { %1111 = dma.done.wait (%p1591_p6), %s197_s10, 1024  }
  0x44   : > { %1113 = vsyncadd (%p1591_p6), %s197_s10, 4294966272  ;;  %p1592_p3 = scmp.eq.s32.totalorder %s1200_s19, 0 }
  0x46   : > { %1115 = dma.done.wait (%p1592_p3), [#allocation7], 16   ;;  %p1593_p13 = pmov %p1592_p3 }
  0x48   : > { %1117 = vsyncadd (%p1593_p13), [#allocation7], 4294967280 }
  0x49   : > { %209 = sfence }
  0x4a   : > { %v1320_v0 = vld [vmem:[%s200_s11] sm:$0xff]  ;;  %v1322_v1 = vld [vmem:[%s200_s11 + $0x8] sm:$0xff]  ;;  %v1324_v2 = vld [vmem:[%s200_s11 + $0x10] sm:$0xff]  ;;  %vm313_vm0 = vcmask 64512   ;;  %s255_s29 = sld [smem:[#allocation8]]  ;;  %s911_s9 = sld [smem:[#allocation8 + $0x9]] }
  0x4b   : > { %v293_v3 = vadd.f32 %v1322_v1, %v1320_v0  ;;  %v281_v4 = vmax.f32 %v1320_v0, %v1322_v1  ;;  %v1330_v5 = vld [vmem:[%s200_s11 + $0x18] sm:$0xff]  ;;  %v1336_v8 = vld [vmem:[%s200_s11 + $0x20] sm:$0xff]  ;;  %v1338_v9 = vld [vmem:[%s200_s11 + $0x28] sm:$0xff]  ;;  %s912_s20 = sld [smem:[#allocation8 + $0xa]]  ;;  %s903_s25 = sld [smem:[#allocation8 + $0x1]]  ;;  %vm499_vm3 = vcmask 138240  }
  0x4c   : > { %v296_v6 = vadd.f32 %v1330_v5, %v1324_v2  ;;  %v284_v7 = vmax.f32 %v1324_v2, %v1330_v5  ;;  %v299_v10 = vadd.f32 %v1338_v9, %v1336_v8  ;;  %v287_v11 = vmax.f32 %v1336_v8, %v1338_v9  ;;  %v1344_v12 = vld [vmem:[%s200_s11 + $0x30] sm:$0xff]  ;;  %v1346_v13 = vld [vmem:[%s200_s11 + $0x38] sm:$0xff]  ;;  %v248_v18 = vld [vmem:[%s1577_s1 + $0x8] sm:$0xff]  ;;  %s913_s30 = sld [smem:[#allocation8 + $0xb]]  ;;  %s904_s12 = sld [smem:[#allocation8 + $0x2]] }
  0x4d   : > { %294 = vadd.xlane.f32.xlu0 %v293_v3  ;;  %282 = vmax.xlane.f32.xlu1 %v281_v4  ;;  %v302_v14 = vadd.f32 %v1346_v13, %v1344_v12  ;;  %v290_v15 = vmax.f32 %v1344_v12, %v1346_v13  ;;  %v247_v19 = vld [vmem:[%s1577_s1] sm:$0xff]  ;;  %v249_v25 = vld [vmem:[%s1577_s1 + $0x10] sm:$0xff]  ;;  %v250_v34 = vld [vmem:[%s1577_s1 + $0x18] sm:$0xff]  ;;  %s914_s8 = sld [smem:[#allocation8 + $0xc]]  ;;  %s905_s13 = sld [smem:[#allocation8 + $0x3]]  ;;  %vm563_vm4 = vcmask 121856  }
  0x4e   : > { %s916_s14 = sld [smem:[#allocation8 + $0xe]]  ;;  %s1144_s22 = smov 17   ;;  %vm532_vm6 = vcmask 130048   ;;  %vm596_vm10 = vcmask 7168   ;;  %vm651_vm11 = vcmask 1039360   ;;  %vm684_vm12 = vcmask 924672  }
  0x4f   : > { %s907_s23 = sld [smem:[#allocation8 + $0x5]]  ;;  %s1145_s5 = smov 16   ;;  %vm717_vm13 = vcmask 916480   ;;  %vm748_vm14 = vcmask 908288  }
  0x50   : > { %s917_s10 = sld [smem:[#allocation8 + $0xf]]  ;;  %s1146_s11 = smov 15  }
  0x51   : > { %297 = vadd.xlane.f32.xlu0 %v296_v6  ;;  %285 = vmax.xlane.f32.xlu1 %v284_v7  ;;  %s908_s26 = sld [smem:[#allocation8 + $0x6]]  ;;  %p1602_p12 = scmp.ne.s32.totalorder %s1586_s27, 0 }
  0x55   : > { %300 = vadd.xlane.f32.xlu0 %v299_v10  ;;  %288 = vmax.xlane.f32.xlu1 %v287_v11  ;;  %v252_v10 = vld [vmem:[%s1578_s2 + $0x8] sm:$0xff]  ;;  %v251_v11 = vld [vmem:[%s1578_s2] sm:$0xff] }
  0x59   : > { %303 = vadd.xlane.f32.xlu0 %v302_v14  ;;  %291 = vmax.xlane.f32.xlu1 %v290_v15  ;;  %v254_v15 = vld [vmem:[%s1578_s2 + $0x18] sm:$0xff] }
  0xda   : > { %v295_v16 = vpop.xlane.xlu0 %294  ;;  %v283_v17 = vpop.xlane.xlu1 %282 }
  0xdb   : > { %v305_v22 = vmul.f32 0.00390625, %v295_v16  ;;  %v309_v26 = vmul.f32 %v283_v17, %v247_v19  ;;  %v253_v16 = vld [vmem:[%s1578_s2 + $0x10] sm:$0xff] }
  0xdd   : > { %v328_v30 = vmul.f32 %v305_v22, %v247_v19  ;;  %v314_v35 = vsel %vm313_vm0, %v309_v26, 0.0  ;;  %v1142_v26 = vmov 0.0  }
  0xde   : > { %v298_v20 = vpop.xlane.xlu0 %297  ;;  %v286_v21 = vpop.xlane.xlu1 %285 }
  0xdf   : > { %v306_v23 = vmul.f32 0.00390625, %v298_v20  ;;  %v310_v24 = vmul.f32 %v286_v21, %v248_v18  ;;  %v332_v42 = vsel %vm313_vm0, %v328_v30, 0.0 }
  0xe1   : > { %v329_v27 = vmul.f32 %v306_v23, %v248_v18  ;;  %v315_v31 = vsel %vm313_vm0, %v310_v24, 0.0 }
  0xe2   : > { %v301_v28 = vpop.xlane.xlu0 %300  ;;  %v289_v29 = vpop.xlane.xlu1 %288  ;;  %v316_v39 = vadd.f32 %v315_v31, %v314_v35 }
  0xe3   : > { %v307_v32 = vmul.f32 0.00390625, %v301_v28  ;;  %v311_v33 = vmul.f32 %v289_v29, %v249_v25  ;;  %v333_v36 = vsel %vm313_vm0, %v329_v27, 0.0 }
  0xe4   : > { %v334_v46 = vadd.f32 %v333_v36, %v332_v42 }
  0xe5   : > { %v317_v37 = vsel %vm313_vm0, %v311_v33, 0.0  ;;  %v330_v38 = vmul.f32 %v307_v32, %v249_v25  ;;  %v230_v25 = vlaneseq }
  0xe6   : > { %v304_v40 = vpop.xlane.xlu0 %303  ;;  %v292_v41 = vpop.xlane.xlu1 %291  ;;  %v318_v47 = vadd.f32 %v317_v37, %v316_v39 }
  0xe7   : > { %v335_v43 = vsel %vm313_vm0, %v330_v38, 0.0  ;;  %v308_v44 = vmul.f32 0.00390625, %v304_v40  ;;  %v312_v45 = vmul.f32 %v292_v41, %v250_v34  ;;  %vm241_vm1 = vcmp.lt.s32.totalorder %v230_v25, 128 }
  0xe8   : > { %v336_v50 = vadd.f32 %v335_v43, %v334_v46  ;;  %243 = vst.msk [vmem:[#allocation2] sm:$0x1] %vm241_vm1, %v1142_v26  ;;  %245 = vst.msk [vmem:[#allocation3] sm:$0x1] %vm241_vm1, %v1142_v26  ;;  %vm451_vm2 = vcmp.lt.s32.totalorder %v230_v25, 256 }
  0xe9   : > { %v319_v48 = vsel %vm313_vm0, %v312_v45, 0.0  ;;  %v331_v49 = vmul.f32 %v308_v44, %v250_v34  ;;  %244 = vst.msk [vmem:[#allocation2 + $0x3] sm:$0x1] %vm241_vm1, %v1142_v26  ;;  %246 = vst.msk [vmem:[#allocation3 + $0x3] sm:$0x1] %vm241_vm1, %v1142_v26 }
  0xea   : > { %v320_v51 = vadd.f32 %v319_v48, %v318_v47 }
  0xeb   : > { %v337_v52 = vsel %vm313_vm0, %v331_v49, 0.0 }
  0xec   : > { %v321_v53 = vrot.slane %v320_v51, 4  ;;  %v338_v54 = vadd.f32 %v337_v52, %v336_v50 }
  0xee   : > { %v322_v55 = vadd.f32 %v321_v53, %v320_v51  ;;  %v339_v56 = vrot.slane %v338_v54, 4 }
  0xf0   : > { %v323_v57 = vrot.slane %v322_v55, 2  ;;  %v340_v58 = vadd.f32 %v339_v56, %v338_v54 }
  0xf2   : > { %v324_v59 = vadd.f32 %v323_v57, %v322_v55  ;;  %v341_v60 = vrot.slane %v340_v58, 2 }
  0xf4   : > { %v325_v61 = vrot.slane %v324_v59, 1  ;;  %v342_v62 = vadd.f32 %v341_v60, %v340_v58 }
  0xf6   : > { %v326_v63 = vadd.f32 %v325_v61, %v324_v59  ;;  %v343_v3 = vrot.slane %v342_v62, 1 }
  0xf8   : > { %v344_v4 = vadd.f32 %v343_v3, %v342_v62  ;;  %v327_v6 = vmax.f32 %v326_v63, 0.0 }
  0xfa   : > { %v345_v7 = vmax.f32 %v344_v4, 0.0 }
  0xfc   : > { %v346_v14 = vadd.f32 %v345_v7, %v327_v6  ;;  %v1143_v7 = vmov 1966171168  }
  0xfe   : > { %v348_v17 = vmul.f32 %v346_v14, %v252_v10  ;;  %v347_v18 = vmul.f32 %v346_v14, %v251_v11  ;;  %v350_v21 = vmul.f32 %v346_v14, %v254_v15  ;;  %v349_v22 = vmul.f32 %v346_v14, %v253_v16 }
  0xff   : > { %v437_v10 = vunpack.c.l.s4 %v1143_v7 }
 0x100   : > { %v354_v19 = vsel %vm313_vm0, %v348_v17, 0.0  ;;  %v351_v20 = vsel %vm313_vm0, %v347_v18, 0.0  ;;  %v360_v23 = vsel %vm313_vm0, %v350_v21, 0.0  ;;  %v357_v24 = vsel %vm313_vm0, %v349_v22, 0.0 }
 0x101   : > { %355 = vadd.xlane.f32.xlu1 %v354_v19  ;;  %352 = vadd.xlane.f32.xlu0 %v351_v20  ;;  %v438_v21 = vunpack.c.0.s8 %v437_v10  ;;  %v440_v22 = vshrl.u32 %v230_v25, 7 }
 0x105   : > { %361 = vadd.xlane.f32.xlu1 %v360_v23  ;;  %358 = vadd.xlane.f32.xlu0 %v357_v24 }
 0x18e   : > { %v356_v27 = vpop.xlane.xlu1 %355  ;;  %v353_v28 = vpop.xlane.xlu0 %352 }
 0x18f   : > { %v364_v29 = vsub.f32 0.0, %v356_v27  ;;  %v363_v30 = vsub.f32 0.0, %v353_v28 }
 0x191   : > { %v369_v31 = vmul.f32 1.442695, %v364_v29  ;;  %v367_v32 = vmul.f32 1.442695, %v363_v30 }
 0x192   : > { %v362_v33 = vpop.xlane.xlu1 %361  ;;  %v359_v34 = vpop.xlane.xlu0 %358 }
 0x193   : > { %997 = vpow2.f32 %v369_v31  ;;  %v366_v35 = vsub.f32 0.0, %v362_v33  ;;  %v365_v36 = vsub.f32 0.0, %v359_v34 }
 0x194   : > { %999 = vpow2.f32 %v367_v32  ;;  %v441_v32 = vsub.s32 %v438_v21, %v440_v22 }
 0x195   : > { %v373_v37 = vmul.f32 1.442695, %v366_v35  ;;  %v371_v38 = vmul.f32 1.442695, %v365_v36 }
 0x197   : > { %1001 = vpow2.f32 %v373_v37 }
 0x198   : > { %1003 = vpow2.f32 %v371_v38 }
 0x19d   : > { %v998_v39 = vpop.eup %997 }
 0x19e   : > { %v1000_v40 = vpop.eup %999  ;;  %v376_v41 = vadd.f32 1.0, %v998_v39 }
 0x19f   : > { %v375_v42 = vadd.f32 1.0, %v1000_v40 }
 0x1a0   : > { %1005 = vrcp.f32 %v376_v41 }
 0x1a1   : > { %v1002_v43 = vpop.eup %1001  ;;  %1007 = vrcp.f32 %v375_v42 }
 0x1a2   : > { %v1004_v44 = vpop.eup %1003  ;;  %v378_v45 = vadd.f32 1.0, %v1002_v43 }
 0x1a3   : > { %v377_v46 = vadd.f32 1.0, %v1004_v44 }
 0x1a4   : > { %1009 = vrcp.f32 %v378_v45 }
 0x1a5   : > { %1011 = vrcp.f32 %v377_v46  ;;  %v475_v46 = vstv %s255_s29  ;;  %s918_s29 = sld [smem:[#allocation8 + $0x10]] }
 0x1aa   : > { %v1006_v47 = vpop.eup %1005 }
 0x1ab   : > { %v1008_v48 = vpop.eup %1007  ;;  %v1390_v49 = vmul.f32 %v1006_v47, %v1324_v2  ;;  %v1393_v50 = vmul.f32 %v1006_v47, %v1330_v5  ;;  %v477_v47 = vstv %s911_s9  ;;  %s909_s9 = sld [smem:[#allocation8 + $0x7]] }
 0x1ac   : > { %v1396_v51 = vmul.f32 %v1008_v48, %v1320_v0  ;;  %v1399_v52 = vmul.f32 %v1008_v48, %v1322_v1  ;;  %v510_v48 = vstv %s912_s20  ;;  %s1147_s20 = smov 1  }
 0x1ae   : > { %v1010_v53 = vpop.eup %1009  ;;  %v413_v2 = vadd.f32 %v1390_v49, %v1396_v51  ;;  %v422_v5 = vadd.f32 %v1393_v50, %v1399_v52 }
 0x1af   : > { %v1012_v54 = vpop.eup %1011  ;;  %v1402_v55 = vmul.f32 %v1010_v53, %v1344_v12  ;;  %v1405_v56 = vmul.f32 %v1010_v53, %v1346_v13  ;;  %v1431_v53 = vsub.s32 0, %v440_v22 }
 0x1b0   : > { %v1412_v0 = vmul.f32 %v1012_v54, %v1336_v8  ;;  %v1415_v1 = vmul.f32 %v1012_v54, %v1338_v9 }
 0x1b1   : > { %v396_v57 = vmax.f32 %v1390_v49, %v1402_v55  ;;  %v405_v12 = vmax.f32 %v1393_v50, %v1405_v56 }
 0x1b2   : > { %v395_v13 = vmax.f32 %v1396_v51, %v1412_v0  ;;  %v404_v58 = vmax.f32 %v1399_v52, %v1415_v1  ;;  %v414_v59 = vadd.f32 %v413_v2, %v1412_v0  ;;  %v423_v8 = vadd.f32 %v422_v5, %v1415_v1 }
 0x1b3   : > { %v508_v2 = vstv %s903_s25  ;;  %s919_s25 = sld [smem:[#allocation8 + $0x11]] }
 0x1b4   : > { %v397_v60 = vmax.f32 %v395_v13, %v396_v57  ;;  %v406_v61 = vmax.f32 %v404_v58, %v405_v12  ;;  %v415_v9 = vadd.f32 %v414_v59, %v1402_v55  ;;  %v424_v62 = vadd.f32 %v423_v8, %v1405_v56 }
 0x1b5   : > { %v1433_v12 = vsub.s32 1, %v440_v22  ;;  %v541_v58 = vstv %s913_s30  ;;  %s1148_s30 = smov 127  }
 0x1b6   : > { %v398_v63 = vrot.slane %v397_v60, 4  ;;  %v407_v3 = vrot.slane %v406_v61, 4  ;;  %v416_v4 = vrot.slane %v415_v9, 4  ;;  %v425_v6 = vrot.slane %v424_v62, 4 }
 0x1b8   : > { %v399_v11 = vmax.f32 %v397_v60, %v398_v63  ;;  %v408_v14 = vmax.f32 %v406_v61, %v407_v3  ;;  %v417_v15 = vadd.f32 %v416_v4, %v415_v9  ;;  %v426_v16 = vadd.f32 %v425_v6, %v424_v62 }
 0x1b9   : > { %v1435_v60 = vsub.s32 2, %v440_v22  ;;  %v539_v61 = vstv %s904_s12  ;;  %v627_v22 = vstv %s907_s23  ;;  %s910_s12 = sld [smem:[#allocation8 + $0x8]]  ;;  %s1467_s23 = sld [smem:[#allocation8 + $0x4]] }
 0x1ba   : > { %v400_v17 = vrot.slane %v399_v11, 2  ;;  %v409_v18 = vrot.slane %v408_v14, 2  ;;  %v418_v19 = vrot.slane %v417_v15, 2  ;;  %v427_v20 = vrot.slane %v426_v16, 2 }
 0x1bc   : > { %v401_v23 = vmax.f32 %v399_v11, %v400_v17  ;;  %v410_v24 = vmax.f32 %v408_v14, %v409_v18  ;;  %v419_v26 = vadd.f32 %v418_v19, %v417_v15  ;;  %v428_v27 = vadd.f32 %v427_v20, %v426_v16 }
 0x1bd   : > { %v574_v11 = vstv %s914_s8  ;;  %v572_v14 = vstv %s905_s13  ;;  %v629_v19 = vstv %s916_s14  ;;  %s1149_s8 = smov 113   ;;  %s1150_s13 = smov 112  }
 0x1be   : > { %v402_v28 = vrot.slane %v401_v23, 1  ;;  %v411_v29 = vrot.slane %v410_v24, 1  ;;  %v420_v30 = vrot.slane %v419_v26, 1  ;;  %v429_v31 = vrot.slane %v428_v27, 1  ;;  %s1151_s14 = smov 111  }
 0x1c0   : > { %v403_v33 = vmax.f32 %v401_v23, %v402_v28  ;;  %v412_v34 = vmax.f32 %v410_v24, %v411_v29  ;;  %v421_v35 = vadd.f32 %v420_v30, %v419_v26  ;;  %v430_v36 = vadd.f32 %v429_v31, %v428_v27 }
 0x1c2   : > { %v431_v37 = vmul.f32 0.03125, %v421_v35  ;;  %v432_v38 = vmul.f32 0.03125, %v430_v36  ;;  %v435_v39 = vcombine.low %v403_v33, %v412_v34  ;;  %v660_v33 = vstv %s908_s26 }
 0x1c4   : > { %v442_v40 = vrot.slane %v435_v39, %v441_v32  ;;  %v456_v41 = vcombine.low %v431_v37, %v432_v38  ;;  %v695_v37 = vstv %s918_s29  ;;  %v693_v39 = vstv %s909_s9 }
 0x1c6   : > { %v449_v42 = vrot.slane %v442_v40, %v441_v32  ;;  %v463_v43 = vrot.slane %v456_v41, %v441_v32 }
 0x1c8   : > { %453 = vst.msk [vmem:[#allocation2 + $0x1] sm:$0x3] %vm451_vm2, %v449_v42  ;;  %v470_v44 = vrot.slane %v463_v43, %v441_v32  ;;  %v662_v32 = vstv %s917_s10  ;;  %s926_s10 = sshll.u32 %s1200_s19, 10  ;;  %s794_s19 = scalar_lea.sflag [#allocation6], %s1306_s6 }
 0x1ca   : > { %472 = vst.msk [vmem:[#allocation3 + $0x1] sm:$0x3] %vm451_vm2, %v470_v44 }
 0x1cf   : > { %v473_v45 = vld [vmem:[#allocation2] sm:$0x7] }
 0x1d0   : > { %v476_v5 = vmul.f32 %v475_v46, %v473_v45  ;;  %v509_v8 = vmul.f32 %v508_v2, %v473_v45  ;;  %v540_v4 = vmul.f32 %v539_v61, %v473_v45  ;;  %v573_v20 = vmul.f32 %v572_v14, %v473_v45  ;;  %v625_v21 = vld [vmem:[#allocation2 + $0x1] sm:$0x7] }
 0x1d1   : > { %v474_v54 = vld [vmem:[#allocation3] sm:$0x7]  ;;  %v628_v28 = vmul.f32 %v627_v22, %v625_v21  ;;  %v661_v38 = vmul.f32 %v660_v33, %v625_v21  ;;  %v694_v44 = vmul.f32 %v693_v39, %v625_v21 }
 0x1d2   : > { %v478_v57 = vmul.f32 %v477_v47, %v474_v54  ;;  %v511_v13 = vmul.f32 %v510_v48, %v474_v54  ;;  %v542_v3 = vmul.f32 %v541_v58, %v474_v54  ;;  %v575_v17 = vmul.f32 %v574_v11, %v474_v54  ;;  %v626_v18 = vld [vmem:[#allocation3 + $0x1] sm:$0x7] }
 0x1d3   : > { %v630_v27 = vmul.f32 %v629_v19, %v626_v18  ;;  %v663_v36 = vmul.f32 %v662_v32, %v626_v18  ;;  %v696_v43 = vmul.f32 %v695_v37, %v626_v18  ;;  %v726_v48 = vstv %s919_s25  ;;  %v605_v37 = vld [vmem:[#allocation2 + $0x1] sm:$0x3]  ;;  %s1152_s25 = smov [#allocation9]  }
 0x1d4   : > { %v479_v59 = vadd.f32 %v478_v57, %v476_v5  ;;  %v512_v63 = vadd.f32 %v511_v13, %v509_v8  ;;  %v543_v10 = vadd.f32 %v542_v3, %v540_v4  ;;  %v576_v26 = vadd.f32 %v575_v17, %v573_v20 }
 0x1d5   : > { %v631_v31 = vadd.f32 %v630_v27, %v628_v28  ;;  %v664_v42 = vadd.f32 %v663_v36, %v661_v38  ;;  %v697_v47 = vadd.f32 %v696_v43, %v694_v44  ;;  %v724_v54 = vstv %s910_s12 }
 0x1d6   : > { %v488_v9 = vrot.slane %v479_v59, %v1433_v12  ;;  %v484_v62 = vrot.slane %v479_v59, %v1431_v53  ;;  %v492_v6 = vrot.slane %v479_v59, %v1435_v60  ;;  %v521_v7 = vrot.slane %v512_v63, %v1433_v12 }
 0x1d7   : > { %v517_v15 = vrot.slane %v512_v63, %v1431_v53  ;;  %v548_v16 = vrot.slane %v543_v10, %v1431_v53  ;;  %v525_v23 = vrot.slane %v512_v63, %v1435_v60  ;;  %v556_v24 = vrot.slane %v543_v10, %v1435_v60 }
 0x1d8   : > { %495 = vrot.lane.b32.xlu1 %v488_v9, %s1144_s22  ;;  %493 = vrot.lane.b32.xlu0 %v484_v62, %s1144_s22  ;;  %v552_v29 = vrot.slane %v543_v10, %v1433_v12  ;;  %v585_v30 = vrot.slane %v576_v26, %v1433_v12  ;;  %v581_v34 = vrot.slane %v576_v26, %v1431_v53  ;;  %v607_v38 = vstv %s1467_s23 }
 0x1d9   : > { %v636_v35 = vrot.slane %v631_v31, %v1431_v53  ;;  %v589_v40 = vrot.slane %v576_v26, %v1435_v60  ;;  %v644_v41 = vrot.slane %v631_v31, %v1435_v60  ;;  %v640_v45 = vrot.slane %v631_v31, %v1433_v12 }
 0x1da   : > { %v673_v46 = vrot.slane %v664_v42, %v1433_v12  ;;  %v669_v2 = vrot.slane %v664_v42, %v1431_v53  ;;  %v702_v5 = vrot.slane %v697_v47, %v1431_v53  ;;  %v727_v57 = vmul.f32 %v726_v48, %v626_v18 }
 0x1db   : > { %v725_v13 = vmul.f32 %v724_v54, %v625_v21  ;;  %v677_v58 = vrot.slane %v664_v42, %v1435_v60  ;;  %v710_v59 = vrot.slane %v697_v47, %v1435_v60  ;;  %v706_v61 = vrot.slane %v697_v47, %v1433_v12 }
 0x1dc   : > { %497 = vrot.lane.b32.xlu1 %v492_v6, %s1144_s22  ;;  %528 = vrot.lane.b32.xlu0 %v521_v7, %s1145_s5  ;;  %s1465_s22 = sld [smem:[#allocation8 + $0xd]] }
 0x1dd   : > { %v728_v8 = vadd.f32 %v727_v57, %v725_v13 }
 0x1df   : > { %v737_v9 = vrot.slane %v728_v8, %v1433_v12  ;;  %v733_v62 = vrot.slane %v728_v8, %v1431_v53  ;;  %v741_v63 = vrot.slane %v728_v8, %v1435_v60 }
 0x1e0   : > { %526 = vrot.lane.b32.xlu1 %v517_v15, %s1145_s5  ;;  %557 = vrot.lane.b32.xlu0 %v548_v16, %s1146_s11  ;;  %v231_v16 = vand.u32 127, %v230_v25 }
 0x1e2   : > { %v232_v19 = vadd.s32 128, %v231_v16  ;;  %v233_v60 = vand.u32 15, %v231_v16  ;;  %v609_v25 = vstv %s1465_s22 }
 0x1e4   : > { %530 = vrot.lane.b32.xlu1 %v525_v23, %s1145_s5  ;;  %561 = vrot.lane.b32.xlu0 %v556_v24, %s1146_s11  ;;  %v234_v22 = vand.u32 15, %v232_v19  ;;  %vm1469_vm5 = vcmp.ge.s32.totalorder %v233_v60, 1  ;;  %vm1478_vm8 = vcmp.lt.s32.totalorder %v233_v60, 15 }
 0x1e6   : > { %vm1474_vm7 = vcmp.ge.s32.totalorder %v234_v22, 1  ;;  %vm1482_vm9 = vcmp.lt.s32.totalorder %v234_v22, 15 }
 0x1e8   : > { %559 = vrot.lane.b32.xlu1 %v552_v29, %s1146_s11  ;;  %592 = vrot.lane.b32.xlu0 %v585_v30, %s1147_s20  ;;  %v606_v30 = vld [vmem:[#allocation3 + $0x1] sm:$0x3]  ;;  %s229_s11 = scalar_lea.vmem [#allocation9], %s900_s7 }
 0x1e9   : > { %v610_v43 = vmul.f32 %v609_v25, %v606_v30  ;;  %s807_s26 = sshll.u32 %s229_s11, 4  ;;  %s1531_s26 = int_to_ptr.vmem [resolvable:$true] %s807_s26 }
 0x1ea   : > { %s1066_s7 = scalar_lea.vmem %s1531_s26, 1024 }
 0x1eb   : > { %p1067_p5 = scmp.ne.s32.totalorder %s1531_s26, %s1066_s7 }
 0x1ec   : > { %590 = vrot.lane.b32.xlu1 %v581_v34, %s1147_s20  ;;  %645 = vrot.lane.b32.xlu0 %v636_v35, %s1148_s30 }
 0x1ed   : > { %p1068_p8 = pnand %p1067_p5, %p1602_p12 }
 0x1ef   : > { %p1069_p9 = pneg %p1068_p8 }
 0x1f0   : > { %594 = vrot.lane.b32.xlu1 %v589_v40, %s1147_s20  ;;  %649 = vrot.lane.b32.xlu0 %v644_v41, %s1148_s30  ;;  %s1525_s20 = scalar_lea.hbm %s1580_s4, %s926_s10 }
 0x1f4   : > { %647 = vrot.lane.b32.xlu1 %v640_v45, %s1148_s30  ;;  %680 = vrot.lane.b32.xlu0 %v673_v46, %s1149_s8  ;;  %s1070_s30 = sshll.u32 %s1152_s25, 4  ;;  %s1071_s30 = int_to_ptr.vmem [resolvable:$false] %s1070_s30 }
 0x1f5   : > { %s1072_s12 = scalar_lea.vmem %s1071_s30, 2048  ;;  %p1073_p10 = scmp.lt.s32.totalorder %s1531_s26, %s1071_s30 }
 0x1f6   : > { %p1074_p1 = scmp.lt.s32.totalorder %s1072_s12, %s1066_s7 }
 0x1f8   : > { %678 = vrot.lane.b32.xlu1 %v669_v2, %s1149_s8  ;;  %711 = vrot.lane.b32.xlu0 %v702_v5, %s1150_s13  ;;  %v608_v2 = vmul.f32 %v607_v38, %v605_v37  ;;  %p1075_p4 = por %p1074_p1, %p1073_p10 }
 0x1fa   : > { %p1076_p11 = pnand %p1075_p4, %p1069_p9 }
 0x1fc   : > { %682 = vrot.lane.b32.xlu1 %v677_v58, %s1149_s8  ;;  %715 = vrot.lane.b32.xlu0 %v710_v59, %s1150_s13 }
 0x200   : > { %713 = vrot.lane.b32.xlu1 %v706_v61, %s1150_s13  ;;  %744 = vrot.lane.b32.xlu0 %v737_v9, %s1151_s14  ;;  %v611_v61 = vadd.f32 %v610_v43, %v608_v2 }
 0x204   : > { %742 = vrot.lane.b32.xlu1 %v733_v62, %s1151_s14 }
 0x208   : > { %746 = vrot.lane.b32.xlu1 %v741_v63, %s1151_s14 }
 0x24a   : > { %v496_v3 = vpop.permute.xlu1 %495  ;;  %v494_v4 = vpop.permute.xlu0 %493 }
 0x24b   : > { %v500_v31 = vsel %vm499_vm3, %v494_v4, %v496_v3  ;;  %v616_v4 = vrot.slane %v611_v61, %v1431_v53 }
 0x24c   : > { %v504_v44 = vsel %vm1469_vm5, %v500_v31, 0.0 }
 0x24e   : > { %v498_v6 = vpop.permute.xlu1 %497  ;;  %v529_v7 = vpop.permute.xlu0 %528 }
 0x24f   : > { %v501_v32 = vsel %vm499_vm3, %v496_v3, %v498_v6  ;;  %v620_v6 = vrot.slane %v611_v61, %v1433_v12 }
 0x250   : > { %v505_v45 = vsel %vm1474_vm7, %v501_v32, 0.0 }
 0x252   : > { %v527_v10 = vpop.permute.xlu1 %526  ;;  %v558_v11 = vpop.permute.xlu0 %557 }
 0x253   : > { %v533_v35 = vsel %vm532_vm6, %v527_v10, %v529_v7 }
 0x254   : > { %v537_v48 = vadd.f32 %v533_v35, %v504_v44 }
 0x256   : > { %v531_v14 = vpop.permute.xlu1 %530  ;;  %v562_v15 = vpop.permute.xlu0 %561 }
 0x257   : > { %v534_v36 = vsel %vm532_vm6, %v529_v7, %v531_v14 }
 0x258   : > { %v538_v54 = vadd.f32 %v534_v36, %v505_v45 }
 0x25a   : > { %v560_v17 = vpop.permute.xlu1 %559  ;;  %v593_v18 = vpop.permute.xlu0 %592 }
 0x25b   : > { %v564_v33 = vsel %vm563_vm4, %v558_v11, %v560_v17  ;;  %v565_v34 = vsel %vm563_vm4, %v560_v17, %v562_v15 }
 0x25c   : > { %v568_v46 = vsel %vm1478_vm8, %v564_v33, 0.0  ;;  %v569_v47 = vsel %vm1482_vm9, %v565_v34, 0.0 }
 0x25d   : > { %v570_v59 = vadd.f32 %v568_v46, %v537_v48  ;;  %v571_v8 = vadd.f32 %v569_v47, %v538_v54 }
 0x25e   : > { %v591_v20 = vpop.permute.xlu1 %590  ;;  %v646_v21 = vpop.permute.xlu0 %645 }
 0x25f   : > { %v597_v41 = vsel %vm596_vm10, %v591_v20, %v593_v18 }
 0x260   : > { %v601_v5 = vsel %vm1469_vm5, %v597_v41, 0.0 }
 0x261   : > { %v603_v9 = vadd.f32 %v601_v5, %v570_v59 }
 0x262   : > { %v595_v23 = vpop.permute.xlu1 %594  ;;  %v650_v24 = vpop.permute.xlu0 %649 }
 0x263   : > { %v598_v42 = vsel %vm596_vm10, %v593_v18, %v595_v23  ;;  %v623_v15 = vadd.f32 %v616_v4, %v603_v9 }
 0x264   : > { %v602_v57 = vsel %vm1474_vm7, %v598_v42, 0.0 }
 0x265   : > { %v604_v62 = vadd.f32 %v602_v57, %v571_v8 }
 0x266   : > { %v648_v39 = vpop.permute.xlu1 %647  ;;  %v681_v40 = vpop.permute.xlu0 %680 }
 0x267   : > { %v652_v63 = vsel %vm651_vm11, %v646_v21, %v648_v39  ;;  %v653_v7 = vsel %vm651_vm11, %v648_v39, %v650_v24  ;;  %v624_v16 = vadd.f32 %v620_v6, %v604_v62 }
 0x268   : > { %v656_v11 = vsel %vm1478_vm8, %v652_v63, 0.0  ;;  %v657_v18 = vsel %vm1482_vm9, %v653_v7, 0.0 }
 0x269   : > { %v658_v21 = vadd.f32 %v656_v11, %v623_v15  ;;  %v659_v22 = vadd.f32 %v657_v18, %v624_v16 }
 0x26a   : > { %v679_v13 = vpop.permute.xlu1 %678  ;;  %v712_v58 = vpop.permute.xlu0 %711 }
 0x26b   : > { %v685_v10 = vsel %vm684_vm12, %v679_v13, %v681_v40 }
 0x26c   : > { %v689_v19 = vsel %vm1469_vm5, %v685_v10, 0.0 }
 0x26d   : > { %v691_v23 = vadd.f32 %v689_v19, %v658_v21 }
 0x26e   : > { %v683_v3 = vpop.permute.xlu1 %682  ;;  %v716_v14 = vpop.permute.xlu0 %715 }
 0x26f   : > { %v686_v17 = vsel %vm684_vm12, %v681_v40, %v683_v3 }
 0x270   : > { %v690_v12 = vsel %vm1474_vm7, %v686_v17, 0.0 }
 0x271   : > { %v692_v30 = vadd.f32 %v690_v12, %v659_v22 }
 0x272   : > { %v714_v20 = vpop.permute.xlu1 %713  ;;  %v745_v24 = vpop.permute.xlu0 %744 }
 0x273   : > { %v718_v60 = vsel %vm717_vm13, %v712_v58, %v714_v20  ;;  %v719_v33 = vsel %vm717_vm13, %v714_v20, %v716_v14 }
 0x274   : > { %v722_v31 = vadd.f32 %v718_v60, %v691_v23  ;;  %v723_v36 = vadd.f32 %v719_v33, %v692_v30 }
 0x276   : > { %v743_v25 = vpop.permute.xlu1 %742 }
 0x277   : > { %v749_v32 = vsel %vm748_vm14, %v743_v25, %v745_v24 }
 0x278   : > { %v753_v34 = vsel %vm1478_vm8, %v749_v32, 0.0 }
 0x279   : > { %v755_v26 = vadd.f32 %v753_v34, %v722_v31 }
 0x27a   : > { %v747_v35 = vpop.permute.xlu1 %746 }
 0x27b   : > { %v757_v37 = vsub.f32 0.0, %v755_v26  ;;  %v750_v38 = vsel %vm748_vm14, %v745_v24, %v747_v35 }
 0x27c   : > { %v754_v27 = vsel %vm1482_vm9, %v750_v38, 0.0 }
 0x27d   : > { %v759_v39 = vmul.f32 1.442695, %v757_v37  ;;  %v756_v40 = vadd.f32 %v754_v27, %v723_v36 }
 0x27f   : > { %1013 = vpow2.f32 %v759_v39  ;;  %v758_v41 = vsub.f32 0.0, %v756_v40 }
 0x281   : > { %v761_v42 = vmul.f32 1.442695, %v758_v41 }
 0x283   : > { %1015 = vpow2.f32 %v761_v42 }
 0x289   : > { %v1014_v43 = vpop.eup %1013 }
 0x28a   : > { %v763_v44 = vadd.f32 1.0, %v1014_v43 }
 0x28c   : > { %1017 = vrcp.f32 %v763_v44 }
 0x28d   : > { %v1016_v28 = vpop.eup %1015 }
 0x28e   : > { %v764_v45 = vadd.f32 1.0, %v1016_v28 }
 0x290   : > { %1019 = vrcp.f32 %v764_v45 }
 0x296   : > { %v1018_v46 = vpop.eup %1017 }
 0x297   : > { %v772_v47 = vrot.slane %v1018_v46, %v1431_v53 }
 0x299   : > { %v777_v29 = vmul.f32 %v772_v47, %v1396_v51  ;;  %v779_v48 = vmul.f32 %v772_v47, %v1390_v49  ;;  %v781_v54 = vmul.f32 %v772_v47, %v1412_v0  ;;  %v783_v2 = vmul.f32 %v772_v47, %v1402_v55 }
 0x29a   : > { %v1020_v5 = vpop.eup %1019 }
 0x29b   : > { %785 = vst [vmem:[%s229_s11] sm:$0xff] %v777_v29  ;;  %787 = vst [vmem:[%s229_s11 + $0x10] sm:$0xff] %v779_v48  ;;  %v776_v57 = vrot.slane %v1020_v5, %v1431_v53 }
 0x29c   : > { %789 = vst [vmem:[%s229_s11 + $0x20] sm:$0xff] %v781_v54  ;;  %791 = vst [vmem:[%s229_s11 + $0x30] sm:$0xff] %v783_v2 }
 0x29d   : > { %v778_v49 = vmul.f32 %v776_v57, %v1399_v52  ;;  %v780_v51 = vmul.f32 %v776_v57, %v1393_v50  ;;  %v782_v55 = vmul.f32 %v776_v57, %v1415_v1  ;;  %v784_v0 = vmul.f32 %v776_v57, %v1405_v56 }
 0x29f   : > { %786 = vst [vmem:[%s229_s11 + $0x8] sm:$0xff] %v778_v49  ;;  %788 = vst [vmem:[%s229_s11 + $0x18] sm:$0xff] %v780_v51 }
 0x2a0   : > { %790 = vst [vmem:[%s229_s11 + $0x28] sm:$0xff] %v782_v55  ;;  %792 = vst [vmem:[%s229_s11 + $0x38] sm:$0xff] %v784_v0 }
 0x2a1   : > { %1079 = shalt.err (!%p1076_p11)
}
 0x2a2   : > { %s1080_s8 = scalar_lea.hbm %s1525_s20, 1024  ;;  %s1084_s22 = scalar_lea.hbm %s1580_s4, 2048 }
 0x2a3   : > { %p1081_p0 = scmp.ne.s32.totalorder %s1525_s20, %s1080_s8  ;;  %p1085_p6 = scmp.lt.u32.totalorder %s1525_s20, %s1580_s4 }
 0x2a4   : > { %p1086_p3 = scmp.lt.u32.totalorder %s1084_s22, %s1080_s8  ;;  %p1088_p5 = scmp.lt.u32.totalorder %s1080_s8, %s1525_s20 }
 0x2a5   : > { %p1082_p2 = pnand %p1081_p0, %p1602_p12 }
 0x2a6   : > { %p1087_p13 = por %p1086_p3, %p1085_p6 }
 0x2a7   : > { %p1083_p7 = pneg %p1082_p2 }
 0x2a8   : > { %p1089_p8 = por %p1088_p5, %p1087_p13 }
 0x2aa   : > { %p1090_p9 = pnand %p1089_p8, %p1083_p7 }
 0x2ac   : > { %1093 = shalt.err (!%p1090_p9)
}
 0x2ad   : > { %s1153_s11 = smov 256  }
 0x2ae   : > { %933 = dma.vmem_to_hbm [thread:$0]  (%p1602_p12), %s1531_s26, 1024, %s1525_s20, %s794_s19, %s1153_s11, %s1153_s11, %s1145_s5  }
 0x2af PF: > { %s822_s29 = sand.u32 1, %s1124_s15   ;;  %p1603_p10 = scmp.ne.s32.totalorder %s1587_s28, 0 }
 0x2b0   : > { %p1604_p1 = scmp.ge.s32.totalorder %s1136_s18, 2  ;;  %s823_s9 = scalar_lea.sflag [#allocation6], %s822_s29 }
 0x2b2   : > { %p944_p4 = pnand %p1604_p1, %p1603_p10 }
 0x2b4   : > { %1119 = dma.done.wait (!%p944_p4), %s823_s9, 1024  }
 0x2b5   : > { %1121 = vsyncadd (!%p944_p4), %s823_s9, 4294966272  ;;  %p18_p11 = scmp.ge.s32.totalorder %s1204_s21, 4   ;;  %s1605_s15 = smov %s1128_s16 }
 0x2b6   : > { %s1606_s16 = smov %s1132_s17  ;;  %s1607_s17 = smov %s1216_s24 }
 0x2b7   : > { %s1608_s18 = smov %s1204_s21  ;;  %20 = sbr.rel (!%p18_p11) target bundleno = 6 (0x6), region = 86 }
 0x2be   :  { %828 = vsyncpa [#allocation5], 1 }
 0x2bf   :  { %830 = vsyncpa [#allocation5 + $0x1], 1 }
 0x2c0   :  { %831 = vsyncpa [#allocation6], 1 }
 0x2c1   :  { %833 = vsyncpa [#allocation6 + $0x1], 1 }
 0x2c2   :  { %834 = vsyncpa [#allocation7], 1 }
 0x2c3   :  { %836 = vsyncpa [#allocation7 + $0x1], 1 }

</bundles_post_ra>
